<compile_context>
chip_gen: v5e
topology: v5e:2x2
jax: 0.10.0
libtpu: 0.0.40
codegen_flags: <defaults>
</compile_context>

<pallas_src>
import jax
import jax.numpy as jnp
from jax.experimental import pallas as pl
from jax.experimental.pallas import tpu as pltpu

HIDDEN = 128          # fixed by the module (nn.Linear(128, 1))
TB_DEFAULT = 2048     # batch-tile rows (sweepable; rounded to a multiple of 128)


def _critic_kernel(x_ref, w1_ref, b1_ref, w2_ref, b2_ref, wl_ref, bl_ref, o_ref):
    """Fused MLP for one batch tile: (Linear+ReLU) x2 -> Linear(128, 1)."""
    x = x_ref[...]
    # Layer 0: Linear(state_dim, 128) + ReLU. MXU matmul (bf16 feed by default),
    # f32 accumulation; bias/ReLU on the VPU in f32.
    h = jnp.dot(x, w1_ref[...], preferred_element_type=jnp.float32) + b1_ref[...]
    h = jnp.maximum(h, 0.0)
    # Layer 1: Linear(128, 128) + ReLU (layer_num = 1 repeat).
    h = jnp.dot(h.astype(w2_ref.dtype), w2_ref[...],
                preferred_element_type=jnp.float32) + b2_ref[...]
    h = jnp.maximum(h, 0.0)

    # Critic head Linear(128, 1). A (tb,128)x(128,1) matmul would waste the MXU
    # on a single output column, so keep it on the VPU (mul) + XLU (transpose +
    # sublane reduce). Emitting each 128-row group as a lane-dense (128,) row
    # makes the output block (1, tb//128, 128): every store and the VMEM->HBM
    # writeback use full 128-lane vregs instead of masked 1-lane stores.
    s = h * wl_ref[...]                              # (tb, 128) f32, VPU
    bias = bl_ref[0, 0]                              # scalar from SMEM
    n_groups = o_ref.shape[1]                        # tb // 128, static
    for g in range(n_groups):
        blk = s[g * HIDDEN:(g + 1) * HIDDEN, :]      # (128, 128) static slice
        row = jnp.sum(blk.T, axis=0) + bias          # XLU transpose + sublane reduce
        o_ref[0, g, :] = row.astype(o_ref.dtype)     # lane-dense (128,) store


def critic_forward(x, params, *, tb=TB_DEFAULT, use_bf16=True):
    """x: (batch, state_dim). Returns (batch, 1) float32."""
    batch, state_dim = x.shape
    w1, b1, w2, b2, wl, bl = params

    # Head weight as a (1, 128) f32 row so the kernel lane-broadcasts it on the VPU.
    wl_row = wl.reshape(1, HIDDEN).astype(jnp.float32)

    # bf16 MXU feed by default (f32 accumulation inside the kernel). Under jit
    # these casts are tiny fused ops; pre-cast/cache w1/w2 once for hot loops.
    compute_dtype = jnp.bfloat16 if use_bf16 else jnp.float32
    x_c = x.astype(compute_dtype)
    w1_c = w1.astype(compute_dtype)
    w2_c = w2.astype(compute_dtype)

    # Batch tile: a multiple of 128 rows (legal sublane count for f32 and bf16,
    # and it makes the lane-dense output groups exact), capped so mid-size
    # batches still produce >= 2 grid steps for v7x's two TensorCores.
    groups = pl.cdiv(batch, HIDDEN)                       # number of 128-row groups
    tb = max(HIDDEN, (int(tb) // HIDDEN) * HIDDEN)
    if groups >= 2:
        tb = min(tb, pl.cdiv(groups, 2) * HIDDEN)         # at least 2 grid steps
    else:
        tb = HIDDEN
    g = tb // HIDDEN
    num_tiles = pl.cdiv(batch, tb)                        # ragged last tile is fine
    padded = num_tiles * tb

    # VMEM budget from the actual tile: double-buffered x/out tiles, resident
    # weights, and the in-kernel f32 intermediates, with 2x margin. Stays well
    # under v7x's 64 MiB (and v5e/v6e's 128 MiB) for any sane state_dim.
    itemsize = jnp.dtype(compute_dtype).itemsize
    vmem_need = (2 * tb * state_dim * itemsize                    # x double buffer
                 + 2 * tb * 4                                     # out double buffer
                 + 2 * (state_dim + HIDDEN) * HIDDEN * itemsize   # w1, w2 buffers
                 + 4 * HIDDEN * 4                                 # biases + head row
                 + 3 * tb * HIDDEN * 4)                           # h / s intermediates
    vmem_limit = int(min(max(2 * vmem_need, 16 << 20), 48 << 20))

    resident = lambda shape: pl.BlockSpec(shape, lambda i: (0, 0))
    out = pl.pallas_call(
        _critic_kernel,
        out_shape=jax.ShapeDtypeStruct((num_tiles, g, HIDDEN), jnp.float32),
        grid=(num_tiles,),
        in_specs=[
            pl.BlockSpec((tb, state_dim), lambda i: (i, 0)),        # x tile
            resident((state_dim, HIDDEN)), resident((1, HIDDEN)),   # w1, b1
            resident((HIDDEN, HIDDEN)),    resident((1, HIDDEN)),   # w2, b2
            resident((1, HIDDEN)),                                  # head row
            pl.BlockSpec(memory_space=pltpu.MemorySpace.SMEM),      # head bias scalar
        ],
        out_specs=pl.BlockSpec((1, g, HIDDEN), lambda i: (i, 0, 0)),
        compiler_params=pltpu.CompilerParams(
            dimension_semantics=("parallel",),
            vmem_limit_bytes=vmem_limit),
    )(x_c, w1_c, b1, w2_c, b2, wl_row, bl)

    # Row-major reshape back to a (batch, 1) column; metadata-only in HBM.
    return out.reshape(padded, 1)[:batch]


def init_params(key, state_dim):
    """Deterministic synthetic parameters (PyTorch-like uniform fan-in init)."""
    ks = jax.random.split(key, 6)

    def lin(kw, kb, fan_in, fan_out):
        bound = 1.0 / jnp.sqrt(jnp.float32(fan_in))
        w = jax.random.uniform(kw, (fan_in, fan_out), jnp.float32, -bound, bound)
        b = jax.random.uniform(kb, (1, fan_out), jnp.float32, -bound, bound)
        return w, b

    w1, b1 = lin(ks[0], ks[1], state_dim, HIDDEN)
    w2, b2 = lin(ks[2], ks[3], HIDDEN, HIDDEN)
    wl, bl = lin(ks[4], ks[5], HIDDEN, 1)
    return (w1, b1, w2, b2, wl, bl)


def critic_ref(x, params):
    """Pure-JAX reference for correctness checking."""
    w1, b1, w2, b2, wl, bl = params
    h = jnp.maximum(x @ w1 + b1, 0.0)
    h = jnp.maximum(h @ w2 + b2, 0.0)
    return h @ wl + bl


if __name__ == "__main__":
    key = jax.random.PRNGKey(0)
    k_x, k_p, k_x2 = jax.random.split(key, 3)

    # Small observation vector, e.g. state_shape=(16,). Net.forward flattens
    # any (batch, *state_shape) input to (batch, state_dim).
    batch, state_dim = 2, 16
    s = jax.random.normal(k_x, (batch, state_dim), jnp.float32)
    x = s.reshape(batch, -1)
    params = init_params(k_p, state_dim)
    ref = critic_ref(x, params)

    # Default path: bf16 MXU feed, f32 accumulation (loose tolerance).
    out = critic_forward(x, params)
    jax.block_until_ready(out)
    assert out.shape == (batch, 1)
    assert jnp.allclose(out, ref, atol=5e-2, rtol=5e-2)

    # Pure f32 path: tight tolerance.
    out_f32 = critic_forward(x, params, use_bf16=False)
    jax.block_until_ready(out_f32)
    assert jnp.allclose(out_f32, ref, atol=1e-5, rtol=1e-5)

    # Multi-tile grid, ragged final tile (no wrapper pad), multiple 128-row
    # groups per tile (g > 1 in the lane-dense output path).
    batch2 = 300
    x2 = jax.random.normal(k_x2, (batch2, state_dim), jnp.float32)
    ref2 = critic_ref(x2, params)

    out2_f32 = critic_forward(x2, params, use_bf16=False)   # tb capped to 256 -> 2 steps, g=2
    jax.block_until_ready(out2_f32)
    assert out2_f32.shape == (batch2, 1)
    assert jnp.allclose(out2_f32, ref2, atol=1e-5, rtol=1e-5)

    out2 = critic_forward(x2, params, tb=128)                # bf16, 3 steps, g=1, ragged tail
    jax.block_until_ready(out2)
    assert out2.shape == (batch2, 1)
    assert jnp.allclose(out2, ref2, atol=5e-2, rtol=5e-2)

    print("KERNEL_OK")
</pallas_src>

<mosaic_0001>
module attributes {stable_mosaic.version = 11 : i64} {
  func.func @_critic_kernel(%arg0: i32, %arg1: memref<128x16xbf16, #tpu.memory_space<vmem>>, %arg2: memref<16x128xbf16, #tpu.memory_space<vmem>>, %arg3: memref<1x128xf32, #tpu.memory_space<vmem>>, %arg4: memref<128x128xbf16, #tpu.memory_space<vmem>>, %arg5: memref<1x128xf32, #tpu.memory_space<vmem>>, %arg6: memref<1x128xf32, #tpu.memory_space<vmem>>, %arg7: memref<1x1xf32, #tpu.memory_space<smem>>, %arg8: memref<1x1x128xf32, #tpu.memory_space<vmem>>) attributes {dimension_semantics = [#tpu.dimension_semantics<parallel>], iteration_bounds = array<i64: 1>, scalar_prefetch = 0 : i64, scratch_operands = 0 : i64, tpu.core_type = #tpu.core_type<tc>, window_params = [{transform_indices = @transform_0, window_bounds = array<i64: 128, 16>}, {pipeline_mode = #tpu.pipeline_mode<synchronous>, transform_indices = @transform_1, window_bounds = array<i64: 16, 128>}, {pipeline_mode = #tpu.pipeline_mode<synchronous>, transform_indices = @transform_2, window_bounds = array<i64: 1, 128>}, {pipeline_mode = #tpu.pipeline_mode<synchronous>, transform_indices = @transform_3, window_bounds = array<i64: 128, 128>}, {pipeline_mode = #tpu.pipeline_mode<synchronous>, transform_indices = @transform_4, window_bounds = array<i64: 1, 128>}, {pipeline_mode = #tpu.pipeline_mode<synchronous>, transform_indices = @transform_5, window_bounds = array<i64: 1, 128>}, {transform_indices = @transform_6, window_bounds = array<i64: 1, 1>}, {transform_indices = @transform_7, window_bounds = array<i64: 1, 1, 128>}]} {
    %c0 = arith.constant 0 : index
    %c0_0 = arith.constant 0 : index
    %0 = vector.load %arg1[%c0, %c0_0] : memref<128x16xbf16, #tpu.memory_space<vmem>>, vector<128x16xbf16>
    %c0_1 = arith.constant 0 : index
    %c0_2 = arith.constant 0 : index
    %1 = vector.load %arg2[%c0_1, %c0_2] : memref<16x128xbf16, #tpu.memory_space<vmem>>, vector<16x128xbf16>
    %cst = arith.constant dense<0.000000e+00> : vector<128x128xf32>
    %2 = tpu.matmul %0, %1, %cst {dimension_numbers = #tpu.dot_dimension_numbers<[1], [0], [0], [1], [0, 0, 1, 1], [], []>} : vector<128x16xbf16>, vector<16x128xbf16>, vector<128x128xf32> -> vector<128x128xf32>
    %c0_3 = arith.constant 0 : index
    %c0_4 = arith.constant 0 : index
    %3 = vector.load %arg3[%c0_3, %c0_4] : memref<1x128xf32, #tpu.memory_space<vmem>>, vector<1x128xf32>
    %4 = vector.broadcast %3 : vector<1x128xf32> to vector<128x128xf32>
    %5 = arith.addf %2, %4 : vector<128x128xf32>
    %cst_5 = arith.constant 0.000000e+00 : f32
    %6 = vector.broadcast %cst_5 : f32 to vector<128x128xf32>
    %7 = arith.maximumf %5, %6 : vector<128x128xf32>
    %8 = arith.truncf %7 : vector<128x128xf32> to vector<128x128xbf16>
    %c0_6 = arith.constant 0 : index
    %c0_7 = arith.constant 0 : index
    %9 = vector.load %arg4[%c0_6, %c0_7] : memref<128x128xbf16, #tpu.memory_space<vmem>>, vector<128x128xbf16>
    %cst_8 = arith.constant dense<0.000000e+00> : vector<128x128xf32>
    %10 = tpu.matmul %8, %9, %cst_8 {dimension_numbers = #tpu.dot_dimension_numbers<[1], [0], [0], [1], [0, 0, 1, 1], [], []>} : vector<128x128xbf16>, vector<128x128xbf16>, vector<128x128xf32> -> vector<128x128xf32>
    %c0_9 = arith.constant 0 : index
    %c0_10 = arith.constant 0 : index
    %11 = vector.load %arg5[%c0_9, %c0_10] : memref<1x128xf32, #tpu.memory_space<vmem>>, vector<1x128xf32>
    %12 = vector.broadcast %11 : vector<1x128xf32> to vector<128x128xf32>
    %13 = arith.addf %10, %12 : vector<128x128xf32>
    %cst_11 = arith.constant 0.000000e+00 : f32
    %14 = vector.broadcast %cst_11 : f32 to vector<128x128xf32>
    %15 = arith.maximumf %13, %14 : vector<128x128xf32>
    %c0_12 = arith.constant 0 : index
    %c0_13 = arith.constant 0 : index
    %16 = vector.load %arg6[%c0_12, %c0_13] : memref<1x128xf32, #tpu.memory_space<vmem>>, vector<1x128xf32>
    %17 = vector.broadcast %16 : vector<1x128xf32> to vector<128x128xf32>
    %18 = arith.mulf %15, %17 : vector<128x128xf32>
    %c0_14 = arith.constant 0 : index
    %c0_15 = arith.constant 0 : index
    %19 = memref.load %arg7[%c0_14, %c0_15] : memref<1x1xf32, #tpu.memory_space<smem>>
    %20 = tpu.transpose %18, [1, 0] : vector<128x128xf32> -> vector<128x128xf32>
    %cst_16 = arith.constant dense<0.000000e+00> : vector<128xf32>
    %21 = vector.multi_reduction <add>, %20, %cst_16 [0] : vector<128x128xf32> to vector<128xf32>
    %22 = vector.broadcast %19 : f32 to vector<128xf32>
    %23 = arith.addf %21, %22 : vector<128xf32>
    %c0_17 = arith.constant 0 : index
    %c0_18 = arith.constant 0 : index
    %c0_19 = arith.constant 0 : index
    %24 = vector.load %arg8[%c0_17, %c0_18, %c0_19] : memref<1x1x128xf32, #tpu.memory_space<vmem>>, vector<1x1x128xf32>
    %25 = vector.shape_cast %24 : vector<1x1x128xf32> to vector<128xf32>
    %26 = vector.shape_cast %23 : vector<128xf32> to vector<1x1x128xf32>
    tpu.vector_store %arg8[%c0_17, %c0_18, %c0_19], %26 {strides = array<i32>} : memref<1x1x128xf32, #tpu.memory_space<vmem>>, vector<1x1x128xf32>,
    return
  }
  func.func @transform_0(%arg0: i32) -> (i32, i32) {
    %c0_i32 = arith.constant 0 : i32
    %c0_i32_0 = arith.constant 0 : i32
    return %arg0, %c0_i32 : i32, i32
  }
  func.func @transform_1(%arg0: i32) -> (i32, i32) {
    %c0_i32 = arith.constant 0 : i32
    %c0_i32_0 = arith.constant 0 : i32
    %c0_i32_1 = arith.constant 0 : i32
    return %c0_i32, %c0_i32_0 : i32, i32
  }
  func.func @transform_2(%arg0: i32) -> (i32, i32) {
    %c0_i32 = arith.constant 0 : i32
    %c0_i32_0 = arith.constant 0 : i32
    %c0_i32_1 = arith.constant 0 : i32
    return %c0_i32, %c0_i32_0 : i32, i32
  }
  func.func @transform_3(%arg0: i32) -> (i32, i32) {
    %c0_i32 = arith.constant 0 : i32
    %c0_i32_0 = arith.constant 0 : i32
    %c0_i32_1 = arith.constant 0 : i32
    return %c0_i32, %c0_i32_0 : i32, i32
  }
  func.func @transform_4(%arg0: i32) -> (i32, i32) {
    %c0_i32 = arith.constant 0 : i32
    %c0_i32_0 = arith.constant 0 : i32
    %c0_i32_1 = arith.constant 0 : i32
    return %c0_i32, %c0_i32_0 : i32, i32
  }
  func.func @transform_5(%arg0: i32) -> (i32, i32) {
    %c0_i32 = arith.constant 0 : i32
    %c0_i32_0 = arith.constant 0 : i32
    %c0_i32_1 = arith.constant 0 : i32
    return %c0_i32, %c0_i32_0 : i32, i32
  }
  func.func @transform_6(%arg0: i32) -> (i32, i32) {
    %c0_i32 = arith.constant 0 : i32
    %c0_i32_0 = arith.constant 0 : i32
    %c0_i32_1 = arith.constant 0 : i32
    return %c0_i32, %c0_i32_0 : i32, i32
  }
  func.func @transform_7(%arg0: i32) -> (i32, i32, i32) {
    %c0_i32 = arith.constant 0 : i32
    %c0_i32_0 = arith.constant 0 : i32
    %c0_i32_1 = arith.constant 0 : i32
    return %arg0, %c0_i32, %c0_i32_0 : i32, i32, i32
  }
}

</mosaic_0001>

<bundles_post_ra>
// kernel: tpu_custom_call.1
= control target key start
LH: loop header
LB: loop body
LE: loop exit
PB: predicated region body
PF: predicated region fallthrough
CT: control target
= control target key end

     0   :  { %13 = vsyncpa [#allocation4], 0  ;;  %s1048_s0 = inlined_call_operand.vmem [shape: bf16[2,16], index: 0, kind: input, shape index: {}]   ;;  %s1049_s1 = inlined_call_operand.hbm [shape: bf16[16,128], index: 1, kind: input, shape index: {}]   ;;  %s1050_s2 = inlined_call_operand.vmem [shape: f32[1,128], index: 2, kind: input, shape index: {}]   ;;  %s1051_s3 = inlined_call_operand.hbm [shape: bf16[128,128], index: 3, kind: input, shape index: {}]   ;;  %s1052_s4 = inlined_call_operand.vmem [shape: f32[1,128], index: 4, kind: input, shape index: {}]   ;;  %s1053_s5 = inlined_call_operand.vmem [shape: f32[1,128], index: 5, kind: input, shape index: {}]   ;;  %s1054_s6 = inlined_call_operand.<no memory space> [shape: f32[1,1], index: 6, kind: input, shape index: {}]   ;;  %s1055_s7 = inlined_call_operand.hbm [shape: f32[1,1,128], index: 7, kind: output, shape index: {}]  }
   0x1   :  { %14 = vsyncpa [#allocation7], 0 }
   0x2   :  { %15 = vsyncpa [#allocation5], 0  ;;  %s22_s26 = sshll.u32 %s1049_s1, 4  ;;  %s746_s27 = smov [#allocation3]   ;;  %s23_s26 = int_to_ptr.hbm [resolvable:$true] %s22_s26 }
   0x3   :  { %s24_s28 = sshll.u32 %s746_s27, 4  ;;  %s37_s8 = sshll.u32 %s1051_s3, 4  ;;  %s25_s28 = int_to_ptr.vmem [resolvable:$true] %s24_s28  ;;  %s38_s8 = int_to_ptr.hbm [resolvable:$true] %s37_s8 }
   0x4   :  { %s747_s9 = smov 64   ;;  %s748_s10 = smov 4  }
   0x5   :  { %30 = dma.hbm_to_vmem [thread:$0]  %s23_s26, 128, %s25_s28, [#allocation4], %s747_s9, %s747_s9, %s748_s10  }
   0x6   :  { %s749_s11 = smov [#allocation6]  }
   0x7   :  { %s39_s12 = sshll.u32 %s749_s11, 4  ;;  %s40_s12 = int_to_ptr.vmem [resolvable:$true] %s39_s12 }
   0x8   :  { %45 = dma.hbm_to_vmem [thread:$0]  %s38_s8, 1024, %s40_s12, [#allocation7], %s747_s9, %s747_s9, %s748_s10  }
   0x9   :  { %740 = dma.done.wait [#allocation4], 128  }
   0xa   :  { %741 = vsyncadd [#allocation4], 4294967168 }
   0xb   :  { %742 = dma.done.wait [#allocation7], 1024  }
   0xc   :  { %743 = vsyncadd [#allocation7], 4294966272  ;;  %v642_v0 = vld [vmem:[#allocation3] sm:$0xff]  ;;  %v61_v1 = vld [vmem:[%s1048_s0] sm:$0x1]  ;;  %vm280_vm0 = vcmask 130048  }
   0xd   :  { %v62_v2 = vld [vmem:[%s1048_s0 + $0x1] sm:$0x1]  ;;  %304 = vmatpush.bf16.msra.mxu0 %v642_v0  ;;  %v63_v3 = vld [vmem:[%s1048_s0 + $0x2] sm:$0x1]  ;;  %651 = vmatpush.bf16.msra.mxu3 %v642_v0  ;;  %v64_v4 = vld [vmem:[%s1048_s0 + $0x3] sm:$0x1] }
   0xe   :  { %132 = vst [vmem:[#allocation1] ss:$9 sm:$0xff] %v61_v1  ;;  %v65_v5 = vld [vmem:[%s1048_s0 + $0x4] sm:$0x1]  ;;  %v66_v6 = vld [vmem:[%s1048_s0 + $0x5] sm:$0x1] }
   0xf   :  { %135 = vst [vmem:[#allocation1 + $0x1] ss:$9 sm:$0xff] %v62_v2  ;;  %v67_v7 = vld [vmem:[%s1048_s0 + $0x6] sm:$0x1]  ;;  %v68_v8 = vld [vmem:[%s1048_s0 + $0x7] sm:$0x1] }
  0x10   :  { %138 = vst [vmem:[#allocation1 + $0x2] ss:$9 sm:$0xff] %v63_v3  ;;  %v69_v9 = vld [vmem:[%s1048_s0 + $0x8] sm:$0x1]  ;;  %v70_v10 = vld [vmem:[%s1048_s0 + $0x9] sm:$0x1] }
  0x11   :  { %141 = vst [vmem:[#allocation1 + $0x3] ss:$9 sm:$0xff] %v64_v4  ;;  %v71_v12 = vld [vmem:[%s1048_s0 + $0xa] sm:$0x1]  ;;  %v72_v13 = vld [vmem:[%s1048_s0 + $0xb] sm:$0x1] }
  0x12   :  { %144 = vst [vmem:[#allocation1 + $0x4] ss:$9 sm:$0xff] %v65_v5  ;;  %v73_v14 = vld [vmem:[%s1048_s0 + $0xc] sm:$0x1]  ;;  %v74_v15 = vld [vmem:[%s1048_s0 + $0xd] sm:$0x1] }
  0x13   :  { %147 = vst [vmem:[#allocation1 + $0x5] ss:$9 sm:$0xff] %v66_v6  ;;  %v75_v16 = vld [vmem:[%s1048_s0 + $0xe] sm:$0x1]  ;;  %v76_v17 = vld [vmem:[%s1048_s0 + $0xf] sm:$0x1] }
  0x14   :  { %150 = vst [vmem:[#allocation1 + $0x6] ss:$9 sm:$0xff] %v67_v7  ;;  %v77_v18 = vld [vmem:[%s1048_s0 + $0x10] sm:$0x1]  ;;  %v78_v19 = vld [vmem:[%s1048_s0 + $0x11] sm:$0x1] }
  0x15   :  { %153 = vst [vmem:[#allocation1 + $0x7] ss:$9 sm:$0xff] %v68_v8  ;;  %v79_v21 = vld [vmem:[%s1048_s0 + $0x12] sm:$0x1]  ;;  %v80_v22 = vld [vmem:[%s1048_s0 + $0x13] sm:$0x1] }
  0x16   :  { %v81_v23 = vld [vmem:[%s1048_s0 + $0x14] sm:$0x1]  ;;  %v82_v24 = vld [vmem:[%s1048_s0 + $0x15] sm:$0x1]  ;;  %v83_v25 = vld [vmem:[%s1048_s0 + $0x16] sm:$0x1] }
  0x17   :  { %v84_v26 = vld [vmem:[%s1048_s0 + $0x17] sm:$0x1]  ;;  %v85_v27 = vld [vmem:[%s1048_s0 + $0x18] sm:$0x1]  ;;  %v86_v28 = vld [vmem:[%s1048_s0 + $0x19] sm:$0x1] }
  0x18   :  { %v87_v30 = vld [vmem:[%s1048_s0 + $0x1a] sm:$0x1]  ;;  %v88_v31 = vld [vmem:[%s1048_s0 + $0x1b] sm:$0x1]  ;;  %v89_v32 = vld [vmem:[%s1048_s0 + $0x1c] sm:$0x1] }
  0x19   :  { %v90_v33 = vld [vmem:[%s1048_s0 + $0x1d] sm:$0x1]  ;;  %v91_v34 = vld [vmem:[%s1048_s0 + $0x1e] sm:$0x1]  ;;  %v92_v35 = vld [vmem:[%s1048_s0 + $0x1f] sm:$0x1] }
  0x1a   :  { %v93_v36 = vld [vmem:[%s1048_s0 + $0x20] sm:$0x1]  ;;  %v94_v37 = vld [vmem:[%s1048_s0 + $0x21] sm:$0x1]  ;;  %v95_v39 = vld [vmem:[%s1048_s0 + $0x22] sm:$0x1] }
  0x1b   :  { %v96_v40 = vld [vmem:[%s1048_s0 + $0x23] sm:$0x1]  ;;  %v97_v41 = vld [vmem:[%s1048_s0 + $0x24] sm:$0x1]  ;;  %v98_v42 = vld [vmem:[%s1048_s0 + $0x25] sm:$0x1] }
  0x1c   :  { %v154_v11 = vld [vmem:[#allocation1] sm:$0xff]  ;;  %v101_v45 = vld [vmem:[%s1048_s0 + $0x28] sm:$0x1]  ;;  %v102_v46 = vld [vmem:[%s1048_s0 + $0x29] sm:$0x1]  ;;  %s750_s18 = smov [#allocation8]  }
  0x1d   :  { %602 = vmatmul.msk.bf16.vlgmr.msra.gmra.mxu0 %vm280_vm0, %v154_v11  ;;  %156 = vst [vmem:[#allocation1] ss:$9 sm:$0xff] %v69_v9  ;;  %v99_v43 = vld [vmem:[%s1048_s0 + $0x26] sm:$0x1]  ;;  %v100_v44 = vld [vmem:[%s1048_s0 + $0x27] sm:$0x1] }
  0x1e   :  { %158 = vst [vmem:[#allocation1 + $0x1] ss:$9 sm:$0xff] %v70_v10  ;;  %v103_v48 = vld [vmem:[%s1048_s0 + $0x2a] sm:$0x1]  ;;  %v104_v49 = vld [vmem:[%s1048_s0 + $0x2b] sm:$0x1] }
  0x1f   :  { %160 = vst [vmem:[#allocation1 + $0x2] ss:$9 sm:$0xff] %v71_v12  ;;  %v105_v50 = vld [vmem:[%s1048_s0 + $0x2c] sm:$0x1]  ;;  %v106_v51 = vld [vmem:[%s1048_s0 + $0x2d] sm:$0x1] }
  0x20   :  { %162 = vst [vmem:[#allocation1 + $0x3] ss:$9 sm:$0xff] %v72_v13  ;;  %v107_v52 = vld [vmem:[%s1048_s0 + $0x2e] sm:$0x1]  ;;  %v108_v53 = vld [vmem:[%s1048_s0 + $0x2f] sm:$0x1] }
  0x21   :  { %164 = vst [vmem:[#allocation1 + $0x4] ss:$9 sm:$0xff] %v73_v14  ;;  %v109_v54 = vld [vmem:[%s1048_s0 + $0x30] sm:$0x1]  ;;  %v110_v55 = vld [vmem:[%s1048_s0 + $0x31] sm:$0x1] }
  0x22   :  { %166 = vst [vmem:[#allocation1 + $0x5] ss:$9 sm:$0xff] %v74_v15  ;;  %v111_v57 = vld [vmem:[%s1048_s0 + $0x32] sm:$0x1]  ;;  %v112_v58 = vld [vmem:[%s1048_s0 + $0x33] sm:$0x1] }
  0x23   :  { %168 = vst [vmem:[#allocation1 + $0x6] ss:$9 sm:$0xff] %v75_v16  ;;  %v650_v59 = vld [vmem:[#allocation6 + $0x38] sm:$0xff]  ;;  %v113_v60 = vld [vmem:[%s1048_s0 + $0x34] sm:$0x1]  ;;  %v649_v62 = vld [vmem:[#allocation6 + $0x30] sm:$0xff] }
  0x24   :  { %170 = vst [vmem:[#allocation1 + $0x7] ss:$9 sm:$0xff] %v76_v17  ;;  %v114_v61 = vld [vmem:[%s1048_s0 + $0x35] sm:$0x1]  ;;  %438 = vmatpush.bf16.msra.mxu1 %v650_v59  ;;  %652 = vmatpush.bf16.msra.mxu2 %v650_v59  ;;  %v115_v63 = vld [vmem:[%s1048_s0 + $0x36] sm:$0x1] }
  0x25   :  { %v116_v0 = vld [vmem:[%s1048_s0 + $0x37] sm:$0x1]  ;;  %v648_v1 = vld [vmem:[#allocation6 + $0x28] sm:$0xff]  ;;  %v646_v12 = vld [vmem:[#allocation6 + $0x18] sm:$0xff]  ;;  %s585_s19 = sshll.u32 %s750_s18, 4  ;;  %s587_s22 = sshll.u32 %s1055_s7, 4  ;;  %s586_s19 = int_to_ptr.vmem [resolvable:$true] %s585_s19  ;;  %s588_s22 = int_to_ptr.hbm [resolvable:$true] %s587_s22 }
  0x26   :  { %v647_v2 = vld [vmem:[#allocation6 + $0x20] sm:$0xff]  ;;  %v117_v3 = vld [vmem:[%s1048_s0 + $0x38] sm:$0x1]  ;;  %v118_v4 = vld [vmem:[%s1048_s0 + $0x39] sm:$0x1] }
  0x27   :  { %v119_v6 = vld [vmem:[%s1048_s0 + $0x3a] sm:$0x1]  ;;  %v120_v7 = vld [vmem:[%s1048_s0 + $0x3b] sm:$0x1]  ;;  %v121_v8 = vld [vmem:[%s1048_s0 + $0x3c] sm:$0x1] }
  0x28   :  { %439 = vmatpush.bf16.msra.mxu1 %v649_v62  ;;  %653 = vmatpush.bf16.msra.mxu2 %v649_v62  ;;  %v122_v9 = vld [vmem:[%s1048_s0 + $0x3d] sm:$0x1]  ;;  %v123_v10 = vld [vmem:[%s1048_s0 + $0x3e] sm:$0x1]  ;;  %v124_v11 = vld [vmem:[%s1048_s0 + $0x3f] sm:$0x1] }
  0x29   :  { %v645_v13 = vld [vmem:[#allocation6 + $0x10] sm:$0xff]  ;;  %v644_v15 = vld [vmem:[#allocation6 + $0x8] sm:$0xff]  ;;  %v643_v16 = vld [vmem:[#allocation6] sm:$0xff] }
  0x2b   :  { %v171_v20 = vld [vmem:[#allocation1] sm:$0xff] }
  0x2c   :  { %173 = vst [vmem:[#allocation1] ss:$9 sm:$0xff] %v77_v18  ;;  %440 = vmatpush.bf16.msra.mxu1 %v648_v1  ;;  %654 = vmatpush.bf16.msra.mxu2 %v648_v1  ;;  %v665_v18 = vld [vmem:[%s1050_s2] ss:$0 sm:$0xff] }
  0x2d   :  { %603 = vmatmul.msk.bf16.gmra.mxu0 %vm280_vm0, %v171_v20  ;;  %175 = vst [vmem:[#allocation1 + $0x1] ss:$9 sm:$0xff] %v78_v19 }
  0x2e   :  { %177 = vst [vmem:[#allocation1 + $0x2] ss:$9 sm:$0xff] %v79_v21 }
  0x2f   :  { %179 = vst [vmem:[#allocation1 + $0x3] ss:$9 sm:$0xff] %v80_v22 }
  0x30   :  { %181 = vst [vmem:[#allocation1 + $0x4] ss:$9 sm:$0xff] %v81_v23  ;;  %441 = vmatpush.bf16.msra.mxu1 %v647_v2  ;;  %655 = vmatpush.bf16.msra.mxu2 %v647_v2 }
  0x31   :  { %183 = vst [vmem:[#allocation1 + $0x5] ss:$9 sm:$0xff] %v82_v24 }
  0x32   :  { %185 = vst [vmem:[#allocation1 + $0x6] ss:$9 sm:$0xff] %v83_v25 }
  0x33   :  { %187 = vst [vmem:[#allocation1 + $0x7] ss:$9 sm:$0xff] %v84_v26 }
  0x34   :  { %442 = vmatpush.bf16.msra.mxu1 %v646_v12  ;;  %656 = vmatpush.bf16.msra.mxu2 %v646_v12 }
  0x38   :  { %443 = vmatpush.bf16.msra.mxu1 %v645_v13  ;;  %657 = vmatpush.bf16.msra.mxu2 %v645_v13  ;;  %v1009_v13 = vld [vmem:[%s1053_s5] ss:$0 sm:$0xff] }
  0x3a   :  { %v188_v29 = vld [vmem:[#allocation1] sm:$0xff] }
  0x3b   :  { %190 = vst [vmem:[#allocation1] ss:$9 sm:$0xff] %v85_v27 }
  0x3c   :  { %192 = vst [vmem:[#allocation1 + $0x1] ss:$9 sm:$0xff] %v86_v28  ;;  %444 = vmatpush.bf16.msra.mxu1 %v644_v15  ;;  %658 = vmatpush.bf16.msra.mxu2 %v644_v15 }
  0x3d   :  { %604 = vmatmul.msk.bf16.gmra.mxu0 %vm280_vm0, %v188_v29  ;;  %194 = vst [vmem:[#allocation1 + $0x2] ss:$9 sm:$0xff] %v87_v30 }
  0x3e   :  { %196 = vst [vmem:[#allocation1 + $0x3] ss:$9 sm:$0xff] %v88_v31 }
  0x3f   :  { %198 = vst [vmem:[#allocation1 + $0x4] ss:$9 sm:$0xff] %v89_v32 }
  0x40   :  { %200 = vst [vmem:[#allocation1 + $0x5] ss:$9 sm:$0xff] %v90_v33  ;;  %445 = vmatpush.bf16.msra.mxu1 %v643_v16  ;;  %659 = vmatpush.bf16.msra.mxu2 %v643_v16 }
  0x41   :  { %202 = vst [vmem:[#allocation1 + $0x6] ss:$9 sm:$0xff] %v91_v34 }
  0x42   :  { %204 = vst [vmem:[#allocation1 + $0x7] ss:$9 sm:$0xff] %v92_v35 }
  0x49   :  { %v205_v38 = vld [vmem:[#allocation1] sm:$0xff] }
  0x4a   :  { %207 = vst [vmem:[#allocation1] ss:$9 sm:$0xff] %v93_v36 }
  0x4b   :  { %209 = vst [vmem:[#allocation1 + $0x1] ss:$9 sm:$0xff] %v94_v37 }
  0x4c   :  { %211 = vst [vmem:[#allocation1 + $0x2] ss:$9 sm:$0xff] %v95_v39 }
  0x4d   :  { %605 = vmatmul.msk.bf16.gmra.mxu0 %vm280_vm0, %v205_v38  ;;  %213 = vst [vmem:[#allocation1 + $0x3] ss:$9 sm:$0xff] %v96_v40 }
  0x4e   :  { %215 = vst [vmem:[#allocation1 + $0x4] ss:$9 sm:$0xff] %v97_v41 }
  0x4f   :  { %217 = vst [vmem:[#allocation1 + $0x5] ss:$9 sm:$0xff] %v98_v42 }
  0x50   :  { %219 = vst [vmem:[#allocation1 + $0x6] ss:$9 sm:$0xff] %v99_v43 }
  0x51   :  { %221 = vst [vmem:[#allocation1 + $0x7] ss:$9 sm:$0xff] %v100_v44 }
  0x58   :  { %v222_v47 = vld [vmem:[#allocation1] sm:$0xff] }
  0x59   :  { %224 = vst [vmem:[#allocation1] ss:$9 sm:$0xff] %v101_v45 }
  0x5a   :  { %226 = vst [vmem:[#allocation1 + $0x1] ss:$9 sm:$0xff] %v102_v46 }
  0x5b   :  { %228 = vst [vmem:[#allocation1 + $0x2] ss:$9 sm:$0xff] %v103_v48 }
  0x5c   :  { %230 = vst [vmem:[#allocation1 + $0x3] ss:$9 sm:$0xff] %v104_v49 }
  0x5d   :  { %606 = vmatmul.msk.bf16.gmra.mxu0 %vm280_vm0, %v222_v47  ;;  %232 = vst [vmem:[#allocation1 + $0x4] ss:$9 sm:$0xff] %v105_v50 }
  0x5e   :  { %234 = vst [vmem:[#allocation1 + $0x5] ss:$9 sm:$0xff] %v106_v51 }
  0x5f   :  { %236 = vst [vmem:[#allocation1 + $0x6] ss:$9 sm:$0xff] %v107_v52 }
  0x60   :  { %238 = vst [vmem:[#allocation1 + $0x7] ss:$9 sm:$0xff] %v108_v53 }
  0x67   :  { %v239_v56 = vld [vmem:[#allocation1] sm:$0xff] }
  0x68   :  { %607 = vmatmul.msk.bf16.vlgmr.msra.gmra.mxu3 %vm280_vm0, %v239_v56  ;;  %241 = vst [vmem:[#allocation1] ss:$9 sm:$0xff] %v109_v54 }
  0x69   :  { %243 = vst [vmem:[#allocation1 + $0x1] ss:$9 sm:$0xff] %v110_v55 }
  0x6a   :  { %245 = vst [vmem:[#allocation1 + $0x2] ss:$9 sm:$0xff] %v111_v57 }
  0x6b   :  { %247 = vst [vmem:[#allocation1 + $0x3] ss:$9 sm:$0xff] %v112_v58 }
  0x6c   :  { %249 = vst [vmem:[#allocation1 + $0x4] ss:$9 sm:$0xff] %v113_v60 }
  0x6d   :  { %251 = vst [vmem:[#allocation1 + $0x5] ss:$9 sm:$0xff] %v114_v61 }
  0x6e   :  { %253 = vst [vmem:[#allocation1 + $0x6] ss:$9 sm:$0xff] %v115_v63 }
  0x6f   :  { %255 = vst [vmem:[#allocation1 + $0x7] ss:$9 sm:$0xff] %v116_v0 }
  0x76   :  { %v256_v5 = vld [vmem:[#allocation1] sm:$0xff] }
  0x77   :  { %258 = vst [vmem:[#allocation1] ss:$9 sm:$0xff] %v117_v3 }
  0x78   :  { %608 = vmatmul.msk.bf16.gmra.mxu3 %vm280_vm0, %v256_v5  ;;  %260 = vst [vmem:[#allocation1 + $0x1] ss:$9 sm:$0xff] %v118_v4 }
  0x79   :  { %262 = vst [vmem:[#allocation1 + $0x2] ss:$9 sm:$0xff] %v119_v6 }
  0x7a   :  { %264 = vst [vmem:[#allocation1 + $0x3] ss:$9 sm:$0xff] %v120_v7 }
  0x7b   :  { %266 = vst [vmem:[#allocation1 + $0x4] ss:$9 sm:$0xff] %v121_v8 }
  0x7c   :  { %268 = vst [vmem:[#allocation1 + $0x5] ss:$9 sm:$0xff] %v122_v9 }
  0x7d   :  { %270 = vst [vmem:[#allocation1 + $0x6] ss:$9 sm:$0xff] %v123_v10  ;;  %v1003_v10 = vld [vmem:[%s1052_s4] ss:$0 sm:$0xff] }
  0x7e   :  { %272 = vst [vmem:[#allocation1 + $0x7] ss:$9 sm:$0xff] %v124_v11 }
  0x85   :  { %v273_v14 = vld [vmem:[#allocation1] sm:$0xff] }
  0x88   :  { %609 = vmatmul.msk.bf16.gmra.mxu3 %vm280_vm0, %v273_v14 }
  0x9a   :  { %v306_v17 = vpop.f32.mrf.mxu0 }
  0x9b   :  { %v307_v19 = vadd.f32 %v665_v18, %v306_v17 }
  0x9d   :  { %v346_v22 = vmax.f32 %v307_v19, 0.0 }
  0xa2   :  { %v308_v20 = vpop.f32.mrf.mxu0 }
  0xa3   :  { %v309_v21 = vadd.f32 %v665_v18, %v308_v20 }
  0xa5   :  { %v347_v23 = vmax.f32 %v309_v21, 0.0 }
  0xa7   :  { %v362_v24 = vpack.c.bf16 %v347_v23, %v346_v22 }
  0xa9   :  { %446 = vmatmul.bf16.vlgmr.msra.gmra.mxu1 %v362_v24 }
  0xaa   :  { %v311_v25 = vpop.f32.mrf.mxu0 }
  0xab   :  { %v312_v26 = vadd.f32 %v665_v18, %v311_v25 }
  0xad   :  { %v348_v29 = vmax.f32 %v312_v26, 0.0 }
  0xb2   :  { %v313_v27 = vpop.f32.mrf.mxu0 }
  0xb3   :  { %v314_v28 = vadd.f32 %v665_v18, %v313_v27 }
  0xb5   :  { %v349_v30 = vmax.f32 %v314_v28, 0.0 }
  0xb7   :  { %v363_v31 = vpack.c.bf16 %v349_v30, %v348_v29 }
  0xb9   :  { %451 = vmatmul.bf16.gmra.mxu1 %v363_v31 }
  0xba   :  { %v316_v32 = vpop.f32.mrf.mxu0 }
  0xbb   :  { %v317_v33 = vadd.f32 %v665_v18, %v316_v32 }
  0xbd   :  { %v350_v36 = vmax.f32 %v317_v33, 0.0 }
  0xc2   :  { %v318_v34 = vpop.f32.mrf.mxu0 }
  0xc3   :  { %v319_v35 = vadd.f32 %v665_v18, %v318_v34 }
  0xc5   :  { %v351_v37 = vmax.f32 %v319_v35, 0.0 }
  0xc7   :  { %v364_v38 = vpack.c.bf16 %v351_v37, %v350_v36 }
  0xc9   :  { %456 = vmatmul.bf16.gmra.mxu1 %v364_v38 }
  0xca   :  { %v321_v39 = vpop.f32.mrf.mxu0 }
  0xcb   :  { %v322_v40 = vadd.f32 %v665_v18, %v321_v39 }
  0xcd   :  { %v352_v43 = vmax.f32 %v322_v40, 0.0 }
  0xd2   :  { %v323_v41 = vpop.f32.mrf.mxu0 }
  0xd3   :  { %v324_v42 = vadd.f32 %v665_v18, %v323_v41 }
  0xd5   :  { %v353_v44 = vmax.f32 %v324_v42, 0.0 }
  0xd7   :  { %v365_v45 = vpack.c.bf16 %v353_v44, %v352_v43 }
  0xd9   :  { %461 = vmatmul.bf16.gmra.mxu1 %v365_v45 }
  0xda   :  { %v326_v46 = vpop.f32.mrf.mxu0 }
  0xdb   :  { %v327_v47 = vadd.f32 %v665_v18, %v326_v46 }
  0xdd   :  { %v354_v50 = vmax.f32 %v327_v47, 0.0 }
  0xe2   :  { %v328_v48 = vpop.f32.mrf.mxu0 }
  0xe3   :  { %v329_v49 = vadd.f32 %v665_v18, %v328_v48 }
  0xe5   :  { %v355_v51 = vmax.f32 %v329_v49, 0.0 }
  0xe7   :  { %v366_v52 = vpack.c.bf16 %v355_v51, %v354_v50 }
  0xe9   :  { %466 = vmatmul.bf16.vlgmr.msra.gmra.mxu2 %v366_v52 }
  0xeb   :  { %v331_v53 = vpop.f32.mrf.mxu3 }
  0xec   :  { %v332_v54 = vadd.f32 %v665_v18, %v331_v53 }
  0xee   :  { %v356_v56 = vmax.f32 %v332_v54, 0.0 }
  0xf3   :  { %v333_v55 = vpop.f32.mrf.mxu3 }
  0xf4   :  { %v334_v57 = vadd.f32 %v665_v18, %v333_v55 }
  0xf6   :  { %v357_v58 = vmax.f32 %v334_v57, 0.0 }
  0xf8   :  { %v367_v59 = vpack.c.bf16 %v357_v58, %v356_v56 }
  0xfa   :  { %471 = vmatmul.bf16.gmra.mxu2 %v367_v59 }
  0xfb   :  { %v336_v60 = vpop.f32.mrf.mxu3 }
  0xfc   :  { %v337_v61 = vadd.f32 %v665_v18, %v336_v60 }
  0xfe   :  { %v358_v63 = vmax.f32 %v337_v61, 0.0 }
 0x103   :  { %v338_v62 = vpop.f32.mrf.mxu3 }
 0x104   :  { %v339_v0 = vadd.f32 %v665_v18, %v338_v62 }
 0x106   :  { %v359_v1 = vmax.f32 %v339_v0, 0.0 }
 0x108   :  { %v368_v2 = vpack.c.bf16 %v359_v1, %v358_v63 }
 0x10a   :  { %476 = vmatmul.bf16.gmra.mxu2 %v368_v2 }
 0x10b   :  { %v341_v3 = vpop.f32.mrf.mxu3 }
 0x10c   :  { %v342_v4 = vadd.f32 %v665_v18, %v341_v3 }
 0x10e   :  { %v360_v6 = vmax.f32 %v342_v4, 0.0 }
 0x113   :  { %v343_v5 = vpop.f32.mrf.mxu3 }
 0x114   :  { %v344_v7 = vadd.f32 %v665_v18, %v343_v5 }
 0x116   :  { %v361_v8 = vmax.f32 %v344_v7, 0.0 }
 0x118   :  { %v369_v9 = vpack.c.bf16 %v361_v8, %v360_v6 }
 0x11a   :  { %481 = vmatmul.bf16.gmra.mxu2 %v369_v9 }
 0x126   :  { %v447_v11 = vpop.f32.mrf.mxu1 }
 0x127   :  { %v448_v12 = vadd.f32 %v1003_v10, %v447_v11 }
 0x129   :  { %v487_v14 = vmax.f32 %v448_v12, 0.0 }
 0x12b   :  { %v507_v15 = vmul.f32 %v1009_v13, %v487_v14 }
 0x12d   :  { %524 = vxpose.xlu0.b32.start [1/16] %v507_v15, 128 }
 0x12e   :  { %v449_v16 = vpop.f32.mrf.mxu1 }
 0x12f   :  { %v450_v17 = vadd.f32 %v1003_v10, %v449_v16 }
 0x131   :  { %v488_v18 = vmax.f32 %v450_v17, 0.0 }
 0x133   :  { %v508_v19 = vmul.f32 %v1009_v13, %v488_v18 }
 0x135   :  { %525 = vxpose.xlu0.b32.cont [2/16] %v508_v19, 128 }
 0x136   :  { %v452_v20 = vpop.f32.mrf.mxu1 }
 0x137   :  { %v453_v21 = vadd.f32 %v1003_v10, %v452_v20 }
 0x139   :  { %v489_v22 = vmax.f32 %v453_v21, 0.0 }
 0x13b   :  { %v509_v23 = vmul.f32 %v1009_v13, %v489_v22 }
 0x13d   :  { %526 = vxpose.xlu0.b32.cont [3/16] %v509_v23, 128 }
 0x13e   :  { %v454_v24 = vpop.f32.mrf.mxu1 }
 0x13f   :  { %v455_v25 = vadd.f32 %v1003_v10, %v454_v24 }
 0x141   :  { %v490_v26 = vmax.f32 %v455_v25, 0.0 }
 0x143   :  { %v510_v27 = vmul.f32 %v1009_v13, %v490_v26 }
 0x145   :  { %527 = vxpose.xlu0.b32.cont [4/16] %v510_v27, 128 }
 0x146   :  { %v457_v28 = vpop.f32.mrf.mxu1 }
 0x147   :  { %v458_v29 = vadd.f32 %v1003_v10, %v457_v28 }
 0x149   :  { %v491_v30 = vmax.f32 %v458_v29, 0.0 }
 0x14b   :  { %v511_v31 = vmul.f32 %v1009_v13, %v491_v30 }
 0x14d   :  { %528 = vxpose.xlu0.b32.cont [5/16] %v511_v31, 128 }
 0x14e   :  { %v459_v32 = vpop.f32.mrf.mxu1 }
 0x14f   :  { %v460_v33 = vadd.f32 %v1003_v10, %v459_v32 }
 0x151   :  { %v492_v34 = vmax.f32 %v460_v33, 0.0 }
 0x153   :  { %v512_v35 = vmul.f32 %v1009_v13, %v492_v34 }
 0x155   :  { %529 = vxpose.xlu0.b32.cont [6/16] %v512_v35, 128 }
 0x156   :  { %v462_v36 = vpop.f32.mrf.mxu1 }
 0x157   :  { %v463_v37 = vadd.f32 %v1003_v10, %v462_v36 }
 0x159   :  { %v493_v38 = vmax.f32 %v463_v37, 0.0 }
 0x15b   :  { %v513_v39 = vmul.f32 %v1009_v13, %v493_v38 }
 0x15d   :  { %530 = vxpose.xlu0.b32.cont [7/16] %v513_v39, 128 }
 0x15e   :  { %v464_v40 = vpop.f32.mrf.mxu1 }
 0x15f   :  { %v465_v41 = vadd.f32 %v1003_v10, %v464_v40 }
 0x161   :  { %v494_v42 = vmax.f32 %v465_v41, 0.0 }
 0x163   :  { %v514_v43 = vmul.f32 %v1009_v13, %v494_v42 }
 0x165   :  { %531 = vxpose.xlu0.b32.cont [8/16] %v514_v43, 128 }
 0x16c   :  { %v467_v44 = vpop.f32.mrf.mxu2 }
 0x16d   :  { %v468_v45 = vadd.f32 %v1003_v10, %v467_v44 }
 0x16f   :  { %v495_v46 = vmax.f32 %v468_v45, 0.0 }
 0x171   :  { %v515_v47 = vmul.f32 %v1009_v13, %v495_v46 }
 0x173   :  { %532 = vxpose.xlu0.b32.cont [9/16] %v515_v47, 128 }
 0x174   :  { %v469_v48 = vpop.f32.mrf.mxu2 }
 0x175   :  { %v470_v49 = vadd.f32 %v1003_v10, %v469_v48  ;;  %v577_v48 = vstv %s1054_s6 }
 0x177   :  { %v496_v50 = vmax.f32 %v470_v49, 0.0 }
 0x179   :  { %v516_v51 = vmul.f32 %v1009_v13, %v496_v50 }
 0x17b   :  { %533 = vxpose.xlu0.b32.cont [10/16] %v516_v51, 128 }
 0x17d   :  { %v472_v52 = vpop.f32.mrf.mxu2 }
 0x17e   :  { %v473_v53 = vadd.f32 %v1003_v10, %v472_v52 }
 0x180   :  { %v497_v54 = vmax.f32 %v473_v53, 0.0 }
 0x182   :  { %v517_v55 = vmul.f32 %v1009_v13, %v497_v54 }
 0x184   :  { %534 = vxpose.xlu0.b32.cont [11/16] %v517_v55, 128 }
 0x185   :  { %v474_v56 = vpop.f32.mrf.mxu2 }
 0x186   :  { %v475_v57 = vadd.f32 %v1003_v10, %v474_v56 }
 0x188   :  { %v498_v58 = vmax.f32 %v475_v57, 0.0 }
 0x18a   :  { %v518_v59 = vmul.f32 %v1009_v13, %v498_v58 }
 0x18c   :  { %535 = vxpose.xlu0.b32.cont [12/16] %v518_v59, 128 }
 0x18d   :  { %v477_v60 = vpop.f32.mrf.mxu2 }
 0x18e   :  { %v478_v61 = vadd.f32 %v1003_v10, %v477_v60 }
 0x190   :  { %v499_v62 = vmax.f32 %v478_v61, 0.0 }
 0x192   :  { %v519_v63 = vmul.f32 %v1009_v13, %v499_v62 }
 0x194   :  { %536 = vxpose.xlu0.b32.cont [13/16] %v519_v63, 128 }
 0x195   :  { %v479_v0 = vpop.f32.mrf.mxu2 }
 0x196   :  { %v480_v1 = vadd.f32 %v1003_v10, %v479_v0 }
 0x198   :  { %v500_v2 = vmax.f32 %v480_v1, 0.0 }
 0x19a   :  { %v520_v3 = vmul.f32 %v1009_v13, %v500_v2 }
 0x19c   :  { %537 = vxpose.xlu0.b32.cont [14/16] %v520_v3, 128 }
 0x19d   :  { %v482_v4 = vpop.f32.mrf.mxu2 }
 0x19e   :  { %v483_v5 = vadd.f32 %v1003_v10, %v482_v4 }
 0x1a0   :  { %v501_v6 = vmax.f32 %v483_v5, 0.0 }
 0x1a2   :  { %v521_v7 = vmul.f32 %v1009_v13, %v501_v6 }
 0x1a4   :  { %538 = vxpose.xlu0.b32.cont [15/16] %v521_v7, 128 }
 0x1a5   :  { %v484_v8 = vpop.f32.mrf.mxu2 }
 0x1a6   :  { %v485_v9 = vadd.f32 %v1003_v10, %v484_v8 }
 0x1a8   :  { %v502_v11 = vmax.f32 %v485_v9, 0.0 }
 0x1aa   :  { %v522_v12 = vmul.f32 %v1009_v13, %v502_v11 }
 0x1ac   :  { %539 = vxpose.xlu0.b32.end [16/16] %v522_v12, 128 }
 0x1d8   :  { %v540_v14 = vpop.trf.xlu0 }
 0x1e0   :  { %v541_v15 = vpop.trf.xlu0 }
 0x1e1   :  { %v556_v16 = vadd.f32 %v541_v15, %v540_v14 }
 0x1e8   :  { %v542_v17 = vpop.trf.xlu0 }
 0x1e9   :  { %v557_v18 = vadd.f32 %v556_v16, %v542_v17 }
 0x1f0   :  { %v543_v19 = vpop.trf.xlu0 }
 0x1f1   :  { %v558_v20 = vadd.f32 %v557_v18, %v543_v19 }
 0x1f8   :  { %v544_v21 = vpop.trf.xlu0 }
 0x1f9   :  { %v559_v22 = vadd.f32 %v558_v20, %v544_v21 }
 0x200   :  { %v545_v23 = vpop.trf.xlu0 }
 0x201   :  { %v560_v30 = vadd.f32 %v559_v22, %v545_v23 }
 0x208   :  { %v546_v24 = vpop.trf.xlu0 }
 0x209   :  { %v561_v13 = vadd.f32 %v560_v30, %v546_v24 }
 0x210   :  { %v547_v25 = vpop.trf.xlu0 }
 0x211   :  { %v562_v32 = vadd.f32 %v561_v13, %v547_v25 }
 0x218   :  { %v548_v26 = vpop.trf.xlu0 }
 0x219   :  { %v563_v33 = vadd.f32 %v562_v32, %v548_v26 }
 0x220   :  { %v549_v27 = vpop.trf.xlu0 }
 0x221   :  { %v564_v34 = vadd.f32 %v563_v33, %v549_v27 }
 0x228   :  { %v550_v28 = vpop.trf.xlu0 }
 0x229   :  { %v565_v35 = vadd.f32 %v564_v34, %v550_v28 }
 0x230   :  { %v551_v10 = vpop.trf.xlu0 }
 0x231   :  { %v566_v37 = vadd.f32 %v565_v35, %v551_v10 }
 0x238   :  { %v552_v29 = vpop.trf.xlu0 }
 0x239   :  { %v567_v38 = vadd.f32 %v566_v37, %v552_v29 }
 0x240   :  { %v553_v31 = vpop.trf.xlu0 }
 0x241   :  { %v568_v39 = vadd.f32 %v567_v38, %v553_v31 }
 0x248   :  { %v554_v36 = vpop.trf.xlu0 }
 0x249   :  { %v569_v40 = vadd.f32 %v568_v39, %v554_v36 }
 0x250   :  { %v555_v41 = vpop.trf.xlu0 }
 0x251   :  { %v570_v42 = vadd.f32 %v569_v40, %v555_v41 }
 0x253   :  { %v571_v43 = vrot.slane %v570_v42, 4 }
 0x255   :  { %v572_v44 = vadd.f32 %v571_v43, %v570_v42 }
 0x257   :  { %v573_v45 = vrot.slane %v572_v44, 2 }
 0x259   :  { %v574_v46 = vadd.f32 %v573_v45, %v572_v44 }
 0x25b   :  { %v575_v47 = vrot.slane %v574_v46, 1 }
 0x25d   :  { %v576_v49 = vadd.f32 %v575_v47, %v574_v46 }
 0x25f   :  { %v578_v50 = vadd.f32 %v577_v48, %v576_v49 }
 0x261   :  { %579 = vst [vmem:[#allocation8] sm:$0x1] %v578_v50 }
 0x262   :  { %590 = dma.vmem_to_hbm [thread:$0]  %s586_s19, 16, %s588_s22, [#allocation5]  }
 0x263   :  { %744 = dma.done.wait [#allocation5], 16  }
 0x264   :  { %745 = vsyncadd [#allocation5], 4294967280 }
 0x265   :  { %595 = vsyncpa [#allocation4], 1 }
 0x266   :  { %596 = vsyncpa [#allocation7], 1 }
 0x267   :  { %597 = vsyncpa [#allocation5], 1 }

</bundles_post_ra>
